<compile_context>
chip_gen: v7x
topology: tpu7x:2x2x1
jax: 0.10.0
libtpu: 0.0.40
codegen_flags: <defaults>
</compile_context>

<pallas_src>
import functools

import jax
import jax.numpy as jnp
from jax.experimental import pallas as pl
from jax.experimental.pallas import tpu as pltpu

ALPHA = 1.0
GAMMA = 2          # integer power -> one extra multiply on the VPU


def _focal_loss_kernel(logits_ref, targets_ref, out_ref, acc_ref, *,
                       n_total, tile_n):
    pid = pl.program_id(0)

    # ---- init resident accumulator on the first grid step ----
    @pl.when(pid == 0)
    def _():
        acc_ref[...] = jnp.zeros_like(acc_ref)

    logits = logits_ref[...].astype(jnp.float32)           # (tile_n, C)
    tgt = targets_ref[...]                                  # (tile_n, 1) int32

    # numerically-stable log-softmax pieces along the class (lane) axis
    m = jnp.max(logits, axis=-1, keepdims=True)             # (tile_n, 1)
    shifted = logits - m                                     # (tile_n, C)
    lse = jnp.log(jnp.sum(jnp.exp(shifted), axis=-1, keepdims=True))   # (tile_n, 1)

    # gather shifted[target] per row via iota + mask (fused: no logp tensor)
    cls = jax.lax.broadcasted_iota(jnp.int32, logits.shape, 1)          # (tile_n, C)
    tgt_shift = jnp.sum(jnp.where(cls == tgt, shifted, 0.0),
                        axis=-1, keepdims=True)              # (tile_n, 1)

    # mask rows that fall beyond the true batch (partial last tile)
    row = pid * tile_n + jax.lax.broadcasted_iota(jnp.int32, (tile_n, 1), 0)
    per_row_logp = jnp.where(row < n_total, tgt_shift - lse, 0.0)       # (tile_n, 1)

    # accumulate sum(log p[target]) across grid steps
    acc_ref[...] += jnp.sum(per_row_logp, axis=0, keepdims=True)        # (1, 1)

    # ---- finalize once on the last grid step ----
    @pl.when(pid == pl.num_programs(0) - 1)
    def _():
        ce = -acc_ref[...] * jnp.float32(1.0 / n_total)      # mean CE  (1,1)
        pt = jnp.exp(-ce)
        one_minus_pt = 1.0 - pt
        out_ref[...] = (ALPHA * one_minus_pt * one_minus_pt * ce).astype(out_ref.dtype)


def _pick_tile_n(n, c, itemsize):
    """Largest sublane-aligned row tile whose *padded* VMEM footprint fits."""
    lanes = 128
    padded_c = ((c + lanes - 1) // lanes) * lanes
    # per-row VMEM bytes: logits block (C padded to 128 lanes, native dtype)
    # + targets block (1 padded to 128 lanes, int32)
    vmem_row_bytes = padded_c * itemsize + lanes * 4
    budget = 8 * 1024 * 1024          # per pipeline-buffer set; x2 buffers = 16 MiB
    t = budget // max(1, vmem_row_bytes)
    t = max(8, min(16384, t))
    t = (t // 8) * 8                  # sublane-aligned block
    if n <= t:
        return n                      # single block == full dim -> always legal
    return t


def focal_loss(logits, targets, *, tile_n=None):
    """logits: (N, C) float array (any float dtype), targets: (N,) int labels
    -> scalar focal loss (alpha=1, gamma=2, reduction='mean')."""
    n, c = logits.shape
    itemsize = jnp.dtype(logits.dtype).itemsize
    if tile_n is None:
        tile_n = _pick_tile_n(n, c, itemsize)
    grid = (pl.cdiv(n, tile_n),)

    targets2d = targets.astype(jnp.int32).reshape(n, 1)

    kernel = functools.partial(_focal_loss_kernel, n_total=n, tile_n=tile_n)

    cost = pl.CostEstimate(
        flops=6 * n * c,
        transcendentals=n * c,            # exp in the softmax
        bytes_accessed=n * c * itemsize + n * 4 + 4,
    )

    out = pl.pallas_call(
        kernel,
        out_shape=jax.ShapeDtypeStruct((1, 1), jnp.float32),
        grid=grid,
        in_specs=[
            pl.BlockSpec((tile_n, c), lambda i: (i, 0)),    # logits tile
            pl.BlockSpec((tile_n, 1), lambda i: (i, 0)),    # targets tile
        ],
        out_specs=pl.BlockSpec((1, 1), lambda i: (0, 0)),   # resident scalar out
        scratch_shapes=[pltpu.VMEM((1, 1), jnp.float32)],   # accumulator
        compiler_params=pltpu.CompilerParams(
            dimension_semantics=("arbitrary",),             # grid axis is a reduction
            vmem_limit_bytes=32 * 1024 * 1024,
        ),
        cost_estimate=cost,
    )(logits, targets2d)                                    # no wrapper-side f32 cast
    return out[0, 0]


def focal_loss_ref(logits, targets):
    """Pure-JAX reference mirroring the PyTorch module (reduction='mean')."""
    logp = jax.nn.log_softmax(logits.astype(jnp.float32), axis=-1)
    ce = -jnp.mean(logp[jnp.arange(logits.shape[0]), targets])
    pt = jnp.exp(-ce)
    return ALPHA * (1.0 - pt) ** GAMMA * ce


if __name__ == "__main__":
    key = jax.random.PRNGKey(0)
    k1, k2, k3, k4, k5, k6 = jax.random.split(key, 6)

    # CIFAR-10-style classifier outputs, small batch (single block path).
    N, C = 8, 10
    logits = jax.random.normal(k1, (N, C), dtype=jnp.float32)
    targets = jax.random.randint(k2, (N,), 0, C, dtype=jnp.int32)

    loss = jax.block_until_ready(focal_loss(logits, targets))
    ref = focal_loss_ref(logits, targets)
    assert jnp.allclose(loss, ref, rtol=1e-5, atol=1e-6), (loss, ref)

    # Tiled/accumulator path with a partial last tile (grid=3, 40 % 16 != 0).
    N2, C2 = 40, 10
    logits2 = jax.random.normal(k3, (N2, C2), dtype=jnp.float32)
    targets2 = jax.random.randint(k4, (N2,), 0, C2, dtype=jnp.int32)

    loss2 = jax.block_until_ready(focal_loss(logits2, targets2, tile_n=16))
    ref2 = focal_loss_ref(logits2, targets2)
    assert jnp.allclose(loss2, ref2, rtol=1e-5, atol=1e-6), (loss2, ref2)

    # bf16 logits stream (half the HBM bytes), grid > 1.
    N3, C3 = 24, 10
    logits3 = jax.random.normal(k5, (N3, C3), dtype=jnp.bfloat16)
    targets3 = jax.random.randint(k6, (N3,), 0, C3, dtype=jnp.int32)

    loss3 = jax.block_until_ready(focal_loss(logits3, targets3, tile_n=16))
    ref3 = focal_loss_ref(logits3, targets3)
    assert jnp.allclose(loss3, ref3, rtol=1e-5, atol=1e-5), (loss3, ref3)

    print("KERNEL_OK")
</pallas_src>

<mosaic_0001>
module attributes {stable_mosaic.version = 11 : i64} {
  func.func @_focal_loss_kernel(%arg0: i32, %arg1: memref<8x10xf32, #tpu.memory_space<vmem>>, %arg2: memref<8x1xi32, #tpu.memory_space<vmem>>, %arg3: memref<1x1xf32, #tpu.memory_space<vmem>>, %arg4: memref<1x1xf32, #tpu.memory_space<vmem>>) attributes {dimension_semantics = [#tpu.dimension_semantics<arbitrary>], iteration_bounds = array<i64: 1>, scalar_prefetch = 0 : i64, scratch_operands = 1 : i64, tpu.core_type = #tpu.core_type<tc>, window_params = [{transform_indices = @transform_0, window_bounds = array<i64: 8, 10>}, {transform_indices = @transform_1, window_bounds = array<i64: 8, 1>}, {pipeline_mode = #tpu.pipeline_mode<synchronous>, transform_indices = @transform_2, window_bounds = array<i64: 1, 1>}]} {
    %c0_i32 = arith.constant 0 : i32
    %0 = arith.cmpi eq, %arg0, %c0_i32 : i32
    %1 = arith.extui %0 : i1 to i32
    %c0_i32_0 = arith.constant 0 : i32
    %2 = arith.cmpi ne, %1, %c0_i32_0 : i32
    scf.if %2 {
      %cst_16 = arith.constant 0.000000e+00 : f32
      %37 = vector.broadcast %cst_16 : f32 to vector<1x1xf32>
      %c0_17 = arith.constant 0 : index
      %c0_18 = arith.constant 0 : index
      %38 = vector.load %arg4[%c0_17, %c0_18] : memref<1x1xf32, #tpu.memory_space<vmem>>, vector<1x1xf32>
      tpu.vector_store %arg4[%c0_17, %c0_18], %37 {strides = array<i32>} : memref<1x1xf32, #tpu.memory_space<vmem>>, vector<1x1xf32>,
    } else {
    }
    %c0 = arith.constant 0 : index
    %c0_1 = arith.constant 0 : index
    %3 = vector.load %arg1[%c0, %c0_1] : memref<8x10xf32, #tpu.memory_space<vmem>>, vector<8x10xf32>
    %c0_2 = arith.constant 0 : index
    %c0_3 = arith.constant 0 : index
    %4 = vector.load %arg2[%c0_2, %c0_3] : memref<8x1xi32, #tpu.memory_space<vmem>>, vector<8x1xi32>
    %cst = arith.constant dense<0xFF800000> : vector<8xf32>
    %5 = vector.multi_reduction <maximumf>, %3, %cst [1] : vector<8x10xf32> to vector<8xf32>
    %6 = vector.shape_cast %5 : vector<8xf32> to vector<8x1xf32>
    %7 = vector.broadcast %6 : vector<8x1xf32> to vector<8x10xf32>
    %8 = arith.subf %3, %7 : vector<8x10xf32>
    %9 = math.exp %8 : vector<8x10xf32>
    %cst_4 = arith.constant dense<0.000000e+00> : vector<8xf32>
    %10 = vector.multi_reduction <add>, %9, %cst_4 [1] : vector<8x10xf32> to vector<8xf32>
    %11 = vector.shape_cast %10 : vector<8xf32> to vector<8x1xf32>
    %12 = math.log %11 : vector<8x1xf32>
    %13 = tpu.iota {dimensions = array<i32: 1>} : vector<8x10xi32>
    %14 = vector.broadcast %4 : vector<8x1xi32> to vector<8x10xi32>
    %15 = arith.cmpi eq, %13, %14 : vector<8x10xi32>
    %cst_5 = arith.constant 0.000000e+00 : f32
    %16 = vector.broadcast %cst_5 : f32 to vector<8x10xf32>
    %17 = arith.select %15, %8, %16 : vector<8x10xi1>, vector<8x10xf32>
    %cst_6 = arith.constant dense<0.000000e+00> : vector<8xf32>
    %18 = vector.multi_reduction <add>, %17, %cst_6 [1] : vector<8x10xf32> to vector<8xf32>
    %19 = vector.shape_cast %18 : vector<8xf32> to vector<8x1xf32>
    %c8_i32 = arith.constant 8 : i32
    %20 = arith.muli %arg0, %c8_i32 : i32
    %21 = tpu.iota {dimensions = array<i32: 0>} : vector<8x1xi32>
    %22 = vector.broadcast %20 : i32 to vector<8x1xi32>
    %23 = arith.addi %22, %21 : vector<8x1xi32>
    %c8_i32_7 = arith.constant 8 : i32
    %24 = vector.broadcast %c8_i32_7 : i32 to vector<8x1xi32>
    %25 = arith.cmpi slt, %23, %24 : vector<8x1xi32>
    %26 = arith.subf %19, %12 : vector<8x1xf32>
    %cst_8 = arith.constant 0.000000e+00 : f32
    %27 = vector.broadcast %cst_8 : f32 to vector<8x1xf32>
    %28 = arith.select %25, %26, %27 : vector<8x1xi1>, vector<8x1xf32>
    %c0_9 = arith.constant 0 : index
    %c0_10 = arith.constant 0 : index
    %29 = vector.load %arg4[%c0_9, %c0_10] : memref<1x1xf32, #tpu.memory_space<vmem>>, vector<1x1xf32>
    %cst_11 = arith.constant dense<0.000000e+00> : vector<1xf32>
    %30 = vector.multi_reduction <add>, %28, %cst_11 [0] : vector<8x1xf32> to vector<1xf32>
    %31 = vector.shape_cast %30 : vector<1xf32> to vector<1x1xf32>
    %32 = arith.addf %29, %31 : vector<1x1xf32>
    %c0_12 = arith.constant 0 : index
    %c0_13 = arith.constant 0 : index
    %33 = vector.load %arg4[%c0_12, %c0_13] : memref<1x1xf32, #tpu.memory_space<vmem>>, vector<1x1xf32>
    tpu.vector_store %arg4[%c0_12, %c0_13], %32 {strides = array<i32>} : memref<1x1xf32, #tpu.memory_space<vmem>>, vector<1x1xf32>,
    %c0_i32_14 = arith.constant 0 : i32
    %34 = arith.cmpi eq, %arg0, %c0_i32_14 : i32
    %35 = arith.extui %34 : i1 to i32
    %c0_i32_15 = arith.constant 0 : i32
    %36 = arith.cmpi ne, %35, %c0_i32_15 : i32
    scf.if %36 {
      %c0_16 = arith.constant 0 : index
      %c0_17 = arith.constant 0 : index
      %37 = vector.load %arg4[%c0_16, %c0_17] : memref<1x1xf32, #tpu.memory_space<vmem>>, vector<1x1xf32>
      %cst_18 = arith.constant 0.000000e+00 : f32
      %38 = vector.broadcast %cst_18 : f32 to vector<1x1xf32>
      %39 = arith.subf %38, %37 : vector<1x1xf32>
      %cst_19 = arith.constant 1.250000e-01 : f32
      %40 = vector.broadcast %cst_19 : f32 to vector<1x1xf32>
      %41 = arith.mulf %39, %40 : vector<1x1xf32>
      %cst_20 = arith.constant 0.000000e+00 : f32
      %42 = vector.broadcast %cst_20 : f32 to vector<1x1xf32>
      %43 = arith.subf %42, %41 : vector<1x1xf32>
      %44 = math.exp %43 : vector<1x1xf32>
      %cst_21 = arith.constant 1.000000e+00 : f32
      %45 = vector.broadcast %cst_21 : f32 to vector<1x1xf32>
      %46 = arith.subf %45, %44 : vector<1x1xf32>
      %cst_22 = arith.constant 1.000000e+00 : f32
      %47 = vector.broadcast %cst_22 : f32 to vector<1x1xf32>
      %48 = arith.mulf %47, %46 : vector<1x1xf32>
      %49 = arith.mulf %48, %46 : vector<1x1xf32>
      %50 = arith.mulf %49, %41 : vector<1x1xf32>
      %c0_23 = arith.constant 0 : index
      %c0_24 = arith.constant 0 : index
      %51 = vector.load %arg3[%c0_23, %c0_24] : memref<1x1xf32, #tpu.memory_space<vmem>>, vector<1x1xf32>
      tpu.vector_store %arg3[%c0_23, %c0_24], %50 {strides = array<i32>} : memref<1x1xf32, #tpu.memory_space<vmem>>, vector<1x1xf32>,
    } else {
    }
    return
  }
  func.func @transform_0(%arg0: i32) -> (i32, i32) {
    %c0_i32 = arith.constant 0 : i32
    %c0_i32_0 = arith.constant 0 : i32
    return %arg0, %c0_i32 : i32, i32
  }
  func.func @transform_1(%arg0: i32) -> (i32, i32) {
    %c0_i32 = arith.constant 0 : i32
    %c0_i32_0 = arith.constant 0 : i32
    return %arg0, %c0_i32 : i32, i32
  }
  func.func @transform_2(%arg0: i32) -> (i32, i32) {
    %c0_i32 = arith.constant 0 : i32
    %c0_i32_0 = arith.constant 0 : i32
    %c0_i32_1 = arith.constant 0 : i32
    return %c0_i32, %c0_i32_0 : i32, i32
  }
}

</mosaic_0001>

<bundles_post_ra>
// kernel: tpu_custom_call.1
= control target key start
LH: loop header
LB: loop body
LE: loop exit
PB: predicated region body
PF: predicated region fallthrough
CT: control target
= control target key end

     0   :  { %vm20_vm0 = vcmask 80896   ;;  %s163_s0 = inlined_call_operand.vmem [shape: f32[8,10], index: 0, kind: input, shape index: {}]   ;;  %s164_s1 = inlined_call_operand.vmem [shape: s32[8,1], index: 1, kind: input, shape index: {}]   ;;  %s165_s2 = inlined_call_operand.hbm [shape: f32[1,1], index: 2, kind: output, shape index: {}]  }
   0x1   :  { %v18_v0 = vld [vmem:[%s163_s0] sm:$0xff] }
   0x2   :  { %7 = vsyncpa [#allocation4], 0  ;;  %v21_v1 = vsel %vm20_vm0, %v18_v0, -inf  ;;  %v121_v2 = vmov 0   ;;  %v19_v3 = vld [vmem:[%s164_s1] sm:$0xff]  ;;  %v32_v7 = vlaneseq  ;;  %vm16_vm2 = vcmask 0  }
   0x3   :  { %90 = vset.pattern.permute.xlu0 %v121_v2  ;;  %v122_v14 = vmov 0.0   ;;  %s123_s0 = smov [#allocation3]  }
   0x4   :  { %22 = vmax.xlane.f32.xlu0 %v21_v1  ;;  %v33_v8 = vand.u32 127, %v32_v7  ;;  %17 = vst.msk [vmem:[#allocation2] sm:$0x1] %vm16_vm2, %v122_v14  ;;  %s79_s1 = sshll.u32 %s123_s0, 4  ;;  %s80_s1 = int_to_ptr.vmem [resolvable:$true] %s79_s1 }
   0x5   :  { %s97_s13 = scalar_lea.vmem %s80_s1, 16  ;;  %s101_s14 = scalar_lea.vmem %s80_s1, 32 }
   0x6   :  { %p98_p0 = scmp.ne.s32.totalorder %s80_s1, %s97_s13  ;;  %p102_p1 = scmp.lt.s32.totalorder %s80_s1, %s80_s1 }
   0x7   :  { %p103_p2 = scmp.lt.s32.totalorder %s101_s14, %s97_s13 }
   0x9   :  { %p104_p3 = por %p103_p2, %p102_p1 }
   0xb   :  { %v50_v25 = vld [vmem:[#allocation2] sm:$0x1]  ;;  %p105_p4 = pnand %p104_p3, %p98_p0 }
  0x1a   :  { %35 = vperm.xlu0 %90, %v19_v3  }
  0x91   :  { %v23_v4 = vpop.xlane.xlu0 %22 }
  0x92   :  { %v24_v5 = vsub.f32 %v18_v0, %v23_v4 }
  0x94   :  { %v25_v6 = vmul.f32 1.442695, %v24_v5 }
  0x96   :  { %91 = vpow2.f32 %v25_v6 }
  0x99   :  { %v36_v9 = vpop.permute.xlu0 %35 }
  0x9a   :  { %vm37_vm1 = vcmp.eq.s32.totalorder %v33_v8, %v36_v9 }
  0x9b   :  { %v38_v12 = vsel %vm37_vm1, %v24_v5, 0.0 }
  0x9c   :  { %v39_v13 = vsel %vm20_vm0, %v38_v12, 0.0 }
  0xa0   :  { %v92_v10 = vpop.eup %91 }
  0xa1   :  { %v27_v11 = vsel %vm20_vm0, %v92_v10, 0.0 }
  0xa2   :  { %28 = vadd.xlane.f32.xlu1 %v27_v11 }
  0xa6   :  { %40 = vadd.xlane.f32.xlu1 %v39_v13 }
 0x12f   :  { %v29_v15 = vpop.xlane.xlu1 %28 }
 0x130   :  { %93 = vlog2.f32 %v29_v15 }
 0x133   :  { %v41_v18 = vpop.xlane.xlu1 %40 }
 0x13a   :  { %v94_v16 = vpop.eup %93 }
 0x13b   :  { %v31_v17 = vmul.f32 0.6931472, %v94_v16 }
 0x13d   :  { %v48_v19 = vsub.f32 %v41_v18, %v31_v17 }
 0x13f   :  { %v51_v20 = vrot.slane %v48_v19, 4 }
 0x141   :  { %v52_v21 = vadd.f32 %v51_v20, %v48_v19 }
 0x143   :  { %v53_v22 = vrot.slane %v52_v21, 2 }
 0x145   :  { %v54_v23 = vadd.f32 %v53_v22, %v52_v21 }
 0x147   :  { %v55_v24 = vrot.slane %v54_v23, 1 }
 0x149   :  { %v56_v26 = vadd.f32 %v55_v24, %v54_v23 }
 0x14b   :  { %v57_v27 = vadd.f32 %v56_v26, %v50_v25 }
 0x14d   :  { %59 = vst.msk [vmem:[#allocation2] sm:$0x1] %vm16_vm2, %v57_v27 }
 0x154   :  { %v63_v28 = vld [vmem:[#allocation2] sm:$0x1] }
 0x155   :  { %v64_v29 = vsub.f32 0.0, %v63_v28 }
 0x157   :  { %v65_v30 = vmul.f32 0.125, %v64_v29 }
 0x159   :  { %v66_v31 = vsub.f32 0.0, %v65_v30 }
 0x15b   :  { %v67_v32 = vmul.f32 1.442695, %v66_v31 }
 0x15d   :  { %95 = vpow2.f32 %v67_v32 }
 0x167   :  { %v96_v33 = vpop.eup %95 }
 0x168   :  { %v69_v34 = vsub.f32 1.0, %v96_v33 }
 0x16a   :  { %v70_v35 = vmul.f32 %v69_v34, %v69_v34 }
 0x16c   :  { %v71_v36 = vmul.f32 %v70_v35, %v65_v30 }
 0x16e   :  { %72 = vst.msk [vmem:[#allocation3] sm:$0x1] %vm16_vm2, %v71_v36 }
 0x16f   :  { %108 = shalt.err (!%p105_p4)
}
 0x170   :  { %s109_s17 = scalar_lea.hbm %s165_s2, 16 }
 0x171   :  { %p110_p5 = scmp.ne.s32.totalorder %s165_s2, %s109_s17  ;;  %p113_p6 = scmp.lt.u32.totalorder %s109_s17, %s165_s2 }
 0x173   :  { %p115_p7 = pnand %p113_p6, %p110_p5 }
 0x175   :  { %118 = shalt.err (!%p115_p7)
}
 0x176   :  { %82 = dma.vmem_to_hbm [thread:$0]  %s80_s1, 16, %s165_s2, [#allocation4]  }
 0x177   :  { %119 = dma.done.wait [#allocation4], 16  }
 0x178   :  { %120 = vsyncadd [#allocation4], 4294967280 }
 0x179   :  { %86 = vsyncpa [#allocation4], 1 }

</bundles_post_ra>
